<compile_context>
chip_gen: v5e
topology: v5e:2x2
jax: 0.10.0
libtpu: 0.0.40
codegen_flags: <defaults>
</compile_context>

<pallas_src>
import jax
import jax.numpy as jnp
from jax.experimental import pallas as pl
from jax.experimental.pallas import tpu as pltpu

HIDDEN = 128


def backbone_kernel(x_ref, w1_ref, b1_ref, w2_ref, b2_ref, o_ref):
    # Cast x to bf16 in-register (hidden under the DMA-bound pipeline); fc1 on
    # the MXU with f32 accumulation.
    x_bf = x_ref[...].astype(jnp.bfloat16)
    h = jnp.dot(x_bf, w1_ref[...], preferred_element_type=jnp.float32)
    # bias + relu on the f32 accumulator (works on v5e's f32-only VPU too).
    h = jnp.maximum(h + b1_ref[...], 0.0)
    # fc2: cast the activation back to bf16 only for the MXU operand.
    y = jnp.dot(h.astype(w2_ref.dtype), w2_ref[...],
                preferred_element_type=jnp.float32)
    y = jnp.maximum(y + b2_ref[...], 0.0)
    o_ref[...] = y.astype(o_ref.dtype)


def _round_up(x, m):
    return (x + m - 1) // m * m


def _choose_tm(B, tm_max, min_steps=8):
    # Big tiles amortize the ~0.35 us per-grid-step overhead and issue larger
    # DMAs, but keep >= min_steps grid steps (when B is big enough) so the
    # "parallel" batch axis can shard across v7x's 2 TensorCores.
    # TM multiple of 8 (f32 sublane); x/out tiles are f32 in VMEM.
    tm = min(tm_max,
             _round_up(pl.cdiv(B, min_steps), 8),
             _round_up(B, 8))
    return max(tm, 8)


def backbone_forward(x, w1, b1, w2, b2, *, tm_max=4096, out_dtype=jnp.float32):
    """x: [B, D] f32. w1: [D, 128], b1: [128], w2: [128, 128], b2: [128]."""
    B, D = x.shape
    TM = _choose_tm(B, tm_max)
    grid = (pl.cdiv(B, TM),)  # partial last block pad-read / mask-written

    # Weights are tiny (~80 KiB) and VMEM-resident; casting them in the
    # wrapper is negligible. x stays f32 (cast happens in-kernel).
    w1_bf = w1.astype(jnp.bfloat16)
    w2_bf = w2.astype(jnp.bfloat16)
    b1_2d = b1.reshape(1, HIDDEN).astype(jnp.float32)
    b2_2d = b2.reshape(1, HIDDEN).astype(jnp.float32)

    out_bytes = 2 if out_dtype == jnp.bfloat16 else 4
    cost = pl.CostEstimate(
        flops=2 * B * (D * HIDDEN + HIDDEN * HIDDEN),
        transcendentals=0,
        bytes_accessed=(B * D * 4                      # x (f32)
                        + (D + HIDDEN) * HIDDEN * 2    # weights (bf16)
                        + 2 * HIDDEN * 4               # biases (f32)
                        + B * HIDDEN * out_bytes),     # output
    )

    out = pl.pallas_call(
        backbone_kernel,
        out_shape=jax.ShapeDtypeStruct((B, HIDDEN), out_dtype),
        grid_spec=pl.GridSpec(
            grid=grid,
            in_specs=[
                pl.BlockSpec((TM, D), lambda i: (i, 0)),           # x: batch-tiled
                pl.BlockSpec((D, HIDDEN), lambda i: (0, 0)),       # w1: VMEM-resident
                pl.BlockSpec((1, HIDDEN), lambda i: (0, 0)),       # b1: VMEM-resident
                pl.BlockSpec((HIDDEN, HIDDEN), lambda i: (0, 0)),  # w2: VMEM-resident
                pl.BlockSpec((1, HIDDEN), lambda i: (0, 0)),       # b2: VMEM-resident
            ],
            out_specs=pl.BlockSpec((TM, HIDDEN), lambda i: (i, 0)),
        ),
        compiler_params=pltpu.CompilerParams(
            dimension_semantics=("parallel",),   # shards batch steps across 2 TCs on v7x
            vmem_limit_bytes=32 * 1024 * 1024,   # ~8.5 MiB needed at TM=4096 (lane-padded)
        ),
        cost_estimate=cost,
    )(x, w1_bf, b1_2d, w2_bf, b2_2d)

    return out


if __name__ == "__main__":
    key = jax.random.PRNGKey(0)
    B, D = 8, 32  # batch=8, input_dim=32

    k_x, k_w1, k_b1, k_w2, k_b2 = jax.random.split(key, 5)
    x = jax.random.normal(k_x, (B, D), dtype=jnp.float32)

    # PyTorch-style uniform fan-in init; weights stored as [in, out].
    bound1 = 1.0 / (D ** 0.5)
    w1 = jax.random.uniform(k_w1, (D, HIDDEN), jnp.float32, -bound1, bound1)
    b1 = jax.random.uniform(k_b1, (HIDDEN,), jnp.float32, -bound1, bound1)
    bound2 = 1.0 / (HIDDEN ** 0.5)
    w2 = jax.random.uniform(k_w2, (HIDDEN, HIDDEN), jnp.float32, -bound2, bound2)
    b2 = jax.random.uniform(k_b2, (HIDDEN,), jnp.float32, -bound2, bound2)

    out = backbone_forward(x, w1, b1, w2, b2)
    out = jax.block_until_ready(out)

    # Reference in plain JAX, applying the same bf16 rounding of matmul
    # operands (accumulation stays f32 in both) so tolerances can stay tight.
    def bf16_rt(a):
        return a.astype(jnp.bfloat16).astype(jnp.float32)

    h_ref = jnp.maximum(bf16_rt(x) @ bf16_rt(w1) + b1, 0.0)
    ref = jnp.maximum(bf16_rt(h_ref) @ bf16_rt(w2) + b2, 0.0)

    assert out.shape == (B, HIDDEN)
    assert jnp.allclose(out, ref, atol=1e-3, rtol=1e-3), (
        float(jnp.max(jnp.abs(out - ref))))

    print("KERNEL_OK")
</pallas_src>

<mosaic_0001>
module attributes {stable_mosaic.version = 11 : i64} {
  func.func @backbone_kernel(%arg0: i32, %arg1: memref<8x32xf32, #tpu.memory_space<vmem>>, %arg2: memref<32x128xbf16, #tpu.memory_space<vmem>>, %arg3: memref<1x128xf32, #tpu.memory_space<vmem>>, %arg4: memref<128x128xbf16, #tpu.memory_space<vmem>>, %arg5: memref<1x128xf32, #tpu.memory_space<vmem>>, %arg6: memref<8x128xf32, #tpu.memory_space<vmem>>) attributes {dimension_semantics = [#tpu.dimension_semantics<parallel>], iteration_bounds = array<i64: 1>, scalar_prefetch = 0 : i64, scratch_operands = 0 : i64, tpu.core_type = #tpu.core_type<tc>, window_params = [{transform_indices = @transform_0, window_bounds = array<i64: 8, 32>}, {pipeline_mode = #tpu.pipeline_mode<synchronous>, transform_indices = @transform_1, window_bounds = array<i64: 32, 128>}, {pipeline_mode = #tpu.pipeline_mode<synchronous>, transform_indices = @transform_2, window_bounds = array<i64: 1, 128>}, {pipeline_mode = #tpu.pipeline_mode<synchronous>, transform_indices = @transform_3, window_bounds = array<i64: 128, 128>}, {pipeline_mode = #tpu.pipeline_mode<synchronous>, transform_indices = @transform_4, window_bounds = array<i64: 1, 128>}, {transform_indices = @transform_5, window_bounds = array<i64: 8, 128>}]} {
    %c0 = arith.constant 0 : index
    %c0_0 = arith.constant 0 : index
    %0 = vector.load %arg1[%c0, %c0_0] : memref<8x32xf32, #tpu.memory_space<vmem>>, vector<8x32xf32>
    %1 = arith.truncf %0 : vector<8x32xf32> to vector<8x32xbf16>
    %c0_1 = arith.constant 0 : index
    %c0_2 = arith.constant 0 : index
    %2 = vector.load %arg2[%c0_1, %c0_2] : memref<32x128xbf16, #tpu.memory_space<vmem>>, vector<32x128xbf16>
    %cst = arith.constant dense<0.000000e+00> : vector<8x128xf32>
    %3 = tpu.matmul %1, %2, %cst {dimension_numbers = #tpu.dot_dimension_numbers<[1], [0], [0], [1], [0, 0, 1, 1], [], []>} : vector<8x32xbf16>, vector<32x128xbf16>, vector<8x128xf32> -> vector<8x128xf32>
    %c0_3 = arith.constant 0 : index
    %c0_4 = arith.constant 0 : index
    %4 = vector.load %arg3[%c0_3, %c0_4] : memref<1x128xf32, #tpu.memory_space<vmem>>, vector<1x128xf32>
    %5 = vector.broadcast %4 : vector<1x128xf32> to vector<8x128xf32>
    %6 = arith.addf %3, %5 : vector<8x128xf32>
    %cst_5 = arith.constant 0.000000e+00 : f32
    %7 = vector.broadcast %cst_5 : f32 to vector<8x128xf32>
    %8 = arith.maximumf %6, %7 : vector<8x128xf32>
    %9 = arith.truncf %8 : vector<8x128xf32> to vector<8x128xbf16>
    %c0_6 = arith.constant 0 : index
    %c0_7 = arith.constant 0 : index
    %10 = vector.load %arg4[%c0_6, %c0_7] : memref<128x128xbf16, #tpu.memory_space<vmem>>, vector<128x128xbf16>
    %cst_8 = arith.constant dense<0.000000e+00> : vector<8x128xf32>
    %11 = tpu.matmul %9, %10, %cst_8 {dimension_numbers = #tpu.dot_dimension_numbers<[1], [0], [0], [1], [0, 0, 1, 1], [], []>} : vector<8x128xbf16>, vector<128x128xbf16>, vector<8x128xf32> -> vector<8x128xf32>
    %c0_9 = arith.constant 0 : index
    %c0_10 = arith.constant 0 : index
    %12 = vector.load %arg5[%c0_9, %c0_10] : memref<1x128xf32, #tpu.memory_space<vmem>>, vector<1x128xf32>
    %13 = vector.broadcast %12 : vector<1x128xf32> to vector<8x128xf32>
    %14 = arith.addf %11, %13 : vector<8x128xf32>
    %cst_11 = arith.constant 0.000000e+00 : f32
    %15 = vector.broadcast %cst_11 : f32 to vector<8x128xf32>
    %16 = arith.maximumf %14, %15 : vector<8x128xf32>
    %c0_12 = arith.constant 0 : index
    %c0_13 = arith.constant 0 : index
    %17 = vector.load %arg6[%c0_12, %c0_13] : memref<8x128xf32, #tpu.memory_space<vmem>>, vector<8x128xf32>
    tpu.vector_store %arg6[%c0_12, %c0_13], %16 {strides = array<i32>} : memref<8x128xf32, #tpu.memory_space<vmem>>, vector<8x128xf32>,
    return
  }
  func.func @transform_0(%arg0: i32) -> (i32, i32) {
    %c0_i32 = arith.constant 0 : i32
    %c0_i32_0 = arith.constant 0 : i32
    return %arg0, %c0_i32 : i32, i32
  }
  func.func @transform_1(%arg0: i32) -> (i32, i32) {
    %c0_i32 = arith.constant 0 : i32
    %c0_i32_0 = arith.constant 0 : i32
    %c0_i32_1 = arith.constant 0 : i32
    return %c0_i32, %c0_i32_0 : i32, i32
  }
  func.func @transform_2(%arg0: i32) -> (i32, i32) {
    %c0_i32 = arith.constant 0 : i32
    %c0_i32_0 = arith.constant 0 : i32
    %c0_i32_1 = arith.constant 0 : i32
    return %c0_i32, %c0_i32_0 : i32, i32
  }
  func.func @transform_3(%arg0: i32) -> (i32, i32) {
    %c0_i32 = arith.constant 0 : i32
    %c0_i32_0 = arith.constant 0 : i32
    %c0_i32_1 = arith.constant 0 : i32
    return %c0_i32, %c0_i32_0 : i32, i32
  }
  func.func @transform_4(%arg0: i32) -> (i32, i32) {
    %c0_i32 = arith.constant 0 : i32
    %c0_i32_0 = arith.constant 0 : i32
    %c0_i32_1 = arith.constant 0 : i32
    return %c0_i32, %c0_i32_0 : i32, i32
  }
  func.func @transform_5(%arg0: i32) -> (i32, i32) {
    %c0_i32 = arith.constant 0 : i32
    %c0_i32_0 = arith.constant 0 : i32
    return %arg0, %c0_i32 : i32, i32
  }
}

</mosaic_0001>

<bundles_post_ra>
// kernel: tpu_custom_call.1
= control target key start
LH: loop header
LB: loop body
LE: loop exit
PB: predicated region body
PF: predicated region fallthrough
CT: control target
= control target key end

     0   :  { %10 = vsyncpa [#allocation3], 0  ;;  %s424_s0 = inlined_call_operand.hbm [shape: f32[8,32], index: 0, kind: input, shape index: {}]   ;;  %s425_s1 = inlined_call_operand.hbm [shape: bf16[32,128], index: 1, kind: input, shape index: {}]   ;;  %s426_s2 = inlined_call_operand.vmem [shape: f32[1,128], index: 2, kind: input, shape index: {}]   ;;  %s427_s3 = inlined_call_operand.hbm [shape: bf16[128,128], index: 3, kind: input, shape index: {}]   ;;  %s428_s4 = inlined_call_operand.vmem [shape: f32[1,128], index: 4, kind: input, shape index: {}]   ;;  %s429_s5 = inlined_call_operand.hbm [shape: f32[8,128], index: 5, kind: output, shape index: {}]  }
   0x1   :  { %11 = vsyncpa [#allocation6], 0  ;;  %s28_s20 = sshll.u32 %s425_s1, 4  ;;  %s29_s20 = int_to_ptr.hbm [resolvable:$true] %s28_s20 }
   0x2   :  { %12 = vsyncpa [#allocation4], 0  ;;  %s370_s21 = smov [#allocation5]   ;;  %s18_s25 = sshll.u32 %s424_s0, 4  ;;  %s19_s25 = int_to_ptr.hbm [resolvable:$true] %s18_s25 }
   0x3   :  { %s30_s22 = sshll.u32 %s370_s21, 4  ;;  %s371_s26 = smov 64   ;;  %s31_s22 = int_to_ptr.vmem [resolvable:$true] %s30_s22 }
   0x4   :  { %s372_s27 = smov 4   ;;  %s373_s28 = smov [#allocation2]  }
   0x5   :  { %36 = dma.hbm_to_vmem [thread:$0]  %s29_s20, 256, %s31_s22, [#allocation6], %s371_s26, %s371_s26, %s372_s27  }
   0x6   :  { %s20_s29 = sshll.u32 %s373_s28, 4  ;;  %s43_s7 = sshll.u32 %s427_s3, 4  ;;  %s21_s29 = int_to_ptr.vmem [resolvable:$true] %s20_s29  ;;  %s44_s7 = int_to_ptr.hbm [resolvable:$true] %s43_s7 }
   0x7   :  { %23 = dma.hbm_to_vmem [thread:$0]  %s19_s25, 128, %s21_s29, [#allocation3]  }
   0x8   :  { %s374_s1 = smov [#allocation7]  }
   0x9   :  { %s45_s8 = sshll.u32 %s374_s1, 4  ;;  %s46_s8 = int_to_ptr.vmem [resolvable:$true] %s45_s8 }
   0xa   :  { %51 = dma.hbm_to_vmem [thread:$0]  %s44_s7, 1024, %s46_s8, [#allocation6], %s371_s26, %s371_s26, %s372_s27  }
   0xb   :  { %364 = dma.done.wait [#allocation3], 128  }
   0xc   :  { %365 = vsyncadd [#allocation3], 4294967168 }
   0xd   :  { %366 = dma.done.wait [#allocation6], 1280  }
   0xe   :  { %367 = vsyncadd [#allocation6], 4294966016  ;;  %v251_v0 = vld [vmem:[#allocation5 + $0x8] sm:$0xff]  ;;  %v250_v2 = vld [vmem:[#allocation5] sm:$0xff]  ;;  %vm89_vm0 = vcmask 261120   ;;  %s375_s11 = smov [#allocation8]  }
   0xf   :  { %v259_v1 = vld [vmem:[#allocation7 + $0x38] sm:$0xff]  ;;  %99 = vmatpush.bf16.msra.mxu0 %v251_v0  ;;  %v67_v3 = vld [vmem:[#allocation2] sm:$0xff]  ;;  %v258_v4 = vld [vmem:[#allocation7 + $0x30] sm:$0xff]  ;;  %s196_s12 = sshll.u32 %s375_s11, 4  ;;  %s198_s15 = sshll.u32 %s429_s5, 4  ;;  %s197_s12 = int_to_ptr.vmem [resolvable:$true] %s196_s12  ;;  %s199_s15 = int_to_ptr.hbm [resolvable:$true] %s198_s15 }
  0x10   :  { %176 = vmatpush.bf16.msra.mxu1 %v259_v1  ;;  %v68_v5 = vpack.c.bf16 %v67_v3, %v67_v3  ;;  %v257_v6 = vld [vmem:[#allocation7 + $0x28] sm:$0xff]  ;;  %v256_v7 = vld [vmem:[#allocation7 + $0x20] sm:$0xff]  ;;  %v255_v8 = vld [vmem:[#allocation7 + $0x18] sm:$0xff] }
  0x11   :  { %v254_v9 = vld [vmem:[#allocation7 + $0x10] sm:$0xff]  ;;  %v253_v10 = vld [vmem:[#allocation7 + $0x8] sm:$0xff]  ;;  %v252_v11 = vld [vmem:[#allocation7] sm:$0xff] }
  0x12   :  { %v266_v12 = vld [vmem:[%s426_s2] ss:$0 sm:$0xff] }
  0x13   :  { %100 = vmatpush.bf16.msra.mxu0 %v250_v2  ;;  %v267_v18 = vld [vmem:[%s428_s4] ss:$0 sm:$0xff] }
  0x14   :  { %177 = vmatpush.bf16.msra.mxu1 %v258_v4 }
  0x16   :  { %217 = vmatmul.msk.bf16.vlgmr.msra.gmra.mxu0 %vm89_vm0, %v68_v5 }
  0x18   :  { %178 = vmatpush.bf16.msra.mxu1 %v257_v6 }
  0x1c   :  { %179 = vmatpush.bf16.msra.mxu1 %v256_v7 }
  0x20   :  { %180 = vmatpush.bf16.msra.mxu1 %v255_v8 }
  0x24   :  { %181 = vmatpush.bf16.msra.mxu1 %v254_v9 }
  0x28   :  { %182 = vmatpush.bf16.msra.mxu1 %v253_v10 }
  0x2c   :  { %183 = vmatpush.bf16.msra.mxu1 %v252_v11 }
  0x93   :  { %v102_v13 = vpop.f32.mrf.mxu0 }
  0x94   :  { %v103_v14 = vadd.f32 %v266_v12, %v102_v13 }
  0x96   :  { %v106_v15 = vmax.f32 %v103_v14, 0.0 }
  0x98   :  { %v107_v16 = vpack.c.bf16 %v106_v15, %v106_v15 }
  0x9a   :  { %184 = vmatmul.bf16.vlgmr.msra.gmra.mxu1 %v107_v16 }
  0x9b   :  { %v104_v17 = vpop.f32.mrf.mxu0 }
 0x117   :  { %v185_v19 = vpop.f32.mrf.mxu1 }
 0x118   :  { %v186_v20 = vadd.f32 %v267_v18, %v185_v19 }
 0x11a   :  { %v189_v21 = vmax.f32 %v186_v20, 0.0 }
 0x11c   :  { %190 = vst [vmem:[#allocation8] sm:$0xff] %v189_v21 }
 0x11d   :  { %201 = dma.vmem_to_hbm [thread:$0]  %s197_s12, 128, %s199_s15, [#allocation4]  }
 0x11f   :  { %v187_v22 = vpop.f32.mrf.mxu1 }
 0x120   :  { %368 = dma.done.wait [#allocation4], 128  }
 0x121   :  { %369 = vsyncadd [#allocation4], 4294967168 }
 0x122   :  { %206 = vsyncpa [#allocation3], 1 }
 0x123   :  { %207 = vsyncpa [#allocation6], 1 }
 0x124   :  { %208 = vsyncpa [#allocation4], 1 }

</bundles_post_ra>
